<compile_context>
chip_gen: v5e
topology: v5e:2x2
jax: 0.10.0
libtpu: 0.0.40
codegen_flags: <defaults>
</compile_context>

<pallas_src>
import math
import functools

import jax
import jax.numpy as jnp
from jax.experimental import pallas as pl
from jax.experimental.pallas import tpu as pltpu

HIDDEN = 256

# Output-tile VMEM budget: 8 MiB per buffer -> 16 MiB double-buffered.
# Safe on v7x (64 MiB physical VMEM) with room for inputs/weights/pipeline.
OUT_TILE_BYTES_CAP = 8 * 1024 * 1024
VMEM_LIMIT_BYTES = 32 * 1024 * 1024     # > v5e's 16 MiB scoped default


def _round_up(n, m):
    return ((n + m - 1) // m) * m


def _cdiv(a, b):
    return -(-a // b)


# ----------------------------------------------------------------------------
# Prologue kernel: dist_term for every batch element, computed once, in f32.
#   dist_term = (gamma ** (||g - ag + skip_layer_dist(xa)|| / 5) - 1) / gamma
# ----------------------------------------------------------------------------
def _dist_kernel(x_ref, a_ref, wsdx_ref, wsda_ref, bsd_ref, out_ref,
                 *, trim_dim, goal_dim, inv_gamma, log_gamma):
    xr = x_ref[...]                                        # [tb, obs + 2*goal] f32
    xt = xr[:, :trim_dim]                                  # obs ++ ag
    ar = a_ref[...]                                        # raw actions (1/max_action folded in wsda)
    sd = (jnp.dot(xt, wsdx_ref[...], preferred_element_type=jnp.float32)
          + jnp.dot(ar, wsda_ref[...], preferred_element_type=jnp.float32)
          + bsd_ref[...])                                  # [tb, goal] f32
    g = xr[:, trim_dim:]                                   # last `goal` cols
    ag = xr[:, trim_dim - goal_dim:trim_dim]
    d = (g - ag) + sd
    dist = jnp.sqrt(jnp.sum(d * d, axis=-1, keepdims=True))            # [tb, 1]
    out_ref[...] = (jnp.exp(log_gamma * (dist * 0.2)) - 1.0) * inv_gamma


# ----------------------------------------------------------------------------
# Main kernel: heavy MLP trunk per row tile (cached), broadcast-add per column
# tile.  Inner (column) iterations are just: load [1,tb_c], add, wide store.
# ----------------------------------------------------------------------------
def _trunk_kernel(x_ref, a_ref, dist_ref,
                  w1x_ref, w1a_ref, b1_ref,
                  wskx_ref, wska_ref, bsk_ref,
                  w2_ref, b2_ref, w3_ref, b3_ref,
                  wadd_ref, badd_ref,
                  q_ref, rs_ref,
                  *, trim_dim, compute_dtype):
    H = HIDDEN
    j = pl.program_id(1)

    # Row side (heavy): computed once per row tile (j == 0), cached in rs_ref.
    # NOTE: this caching requires the column axis to be the innermost grid axis
    # and to be marked "arbitrary" (sequential).  Do not reorder the grid.
    @pl.when(j == 0)
    def _():
        xr = x_ref[...]
        xt = xr[:, :trim_dim]                              # [tb_r, trim] f32
        ar = a_ref[...]                                    # [tb_r, A]   f32
        # skip_val on VPU (mul) + XLU (cross-lane reduce) -> keeps fc1 at N=256.
        skip_val = (jnp.sum(xt * wskx_ref[...], axis=-1, keepdims=True)
                    + jnp.sum(ar * wska_ref[...], axis=-1, keepdims=True)
                    + bsk_ref[...])                        # [tb_r, 1] f32
        xt_c = xt.astype(compute_dtype)
        ar_c = ar.astype(compute_dtype)
        h = jnp.maximum(
            jnp.dot(xt_c, w1x_ref[...], preferred_element_type=jnp.float32)
            + jnp.dot(ar_c, w1a_ref[...], preferred_element_type=jnp.float32)
            + b1_ref[...], 0.0).astype(compute_dtype)
        h = jnp.maximum(
            jnp.dot(h, w2_ref[...], preferred_element_type=jnp.float32)
            + b2_ref[...], 0.0).astype(compute_dtype)
        h = jnp.maximum(
            jnp.dot(h, w3_ref[...], preferred_element_type=jnp.float32)
            + b3_ref[...], 0.0)                            # [tb_r, H] f32
        # add_out as VPU multiply + cross-lane reduce (avoids an N=1 MXU matmul)
        add = jnp.sum(h * wadd_ref[...], axis=-1, keepdims=True) + badd_ref[...]
        rs_ref[...] = add + skip_val                       # pre-summed [tb_r, 1]

    # Column side: pure broadcast-add, wide lane-dense store.
    q_ref[...] = (dist_ref[...] + rs_ref[...]).astype(q_ref.dtype)


# ----------------------------------------------------------------------------
# Parameter packing (done once; 1/max_action folded into the action-row parts)
# ----------------------------------------------------------------------------
def pack_params(params, *, obs, goal, max_action, compute_dtype=jnp.bfloat16):
    trim = obs + goal
    inv_a = 1.0 / float(max_action)

    w1, b1 = params['fc1']          # [in_dim, 256], [1, 256]
    wsk, bsk = params['skip']       # [in_dim, 1],   [1, 1]
    wsd, bsd = params['skip_dist']  # [in_dim, goal],[1, goal]
    w2, b2 = params['fc2']
    w3, b3 = params['fc3']
    wadd, badd = params['add_out']  # [256, 1], [1, 1]

    trunk = (
        w1[:trim].astype(compute_dtype),                            # w1x  [trim, 256]
        (w1[trim:] * inv_a).astype(compute_dtype),                  # w1a  [A, 256]
        b1.astype(jnp.float32),                                     # b1   [1, 256]
        wsk[:trim].reshape(1, -1).astype(jnp.float32),              # wskx [1, trim]
        (wsk[trim:] * inv_a).reshape(1, -1).astype(jnp.float32),    # wska [1, A]
        bsk.astype(jnp.float32),                                    # bsk  [1, 1]
        w2.astype(compute_dtype), b2.astype(jnp.float32),           # w2, b2
        w3.astype(compute_dtype), b3.astype(jnp.float32),           # w3, b3
        wadd.reshape(1, -1).astype(jnp.float32),                    # wadd [1, 256]
        badd.astype(jnp.float32),                                   # badd [1, 1]
    )
    # skip_layer_dist path stays f32 (feeds sqrt of a sum of small squares).
    dist = (
        wsd[:trim].astype(jnp.float32),                             # wsdx [trim, goal]
        (wsd[trim:] * inv_a).astype(jnp.float32),                   # wsda [A, goal]
        bsd.astype(jnp.float32),                                    # bsd  [1, goal]
    )
    return {'trunk': trunk, 'dist': dist}


# ----------------------------------------------------------------------------
# Forward wrapper
# ----------------------------------------------------------------------------
def value_prior_critic_forward(x, actions, packed, *, obs_dim, goal_dim, gamma,
                               compute_dtype=jnp.bfloat16,
                               out_dtype=jnp.float32,
                               max_col_tile=2048):
    B, F_x = x.shape
    A = actions.shape[1]
    trim = obs_dim + goal_dim
    assert F_x == obs_dim + 2 * goal_dim
    out_isz = jnp.dtype(out_dtype).itemsize

    # ---- row-tile selection: 512 for large aligned batches, >=2 tiles for
    #      moderate batches (so the "parallel" axis spans both v7x TCs).
    if B >= 1024 and _round_up(B, 512) == _round_up(B, 256):
        tb_r = 512
    elif B > 256:
        tb_r = 256
    elif B > 64:
        tb_r = _round_up(_cdiv(B, 2), 8)
    else:
        tb_r = _round_up(B, 8)
    Bp_r = _round_up(B, tb_r)
    nrows = Bp_r // tb_r

    # ---- column tile: as wide as possible (lane-dense stores) within the
    #      VMEM budget, while keeping column padding modest.
    B128 = _round_up(B, 128)
    max_tc = max(128, min(int(max_col_tile),
                          (OUT_TILE_BYTES_CAP // (tb_r * out_isz)) // 128 * 128))
    ncols = _cdiv(B128, max_tc)
    tb_c = _round_up(_cdiv(B128, ncols), 128)
    Bp_c = ncols * tb_c

    if Bp_r != B:
        x_p = jnp.pad(x, ((0, Bp_r - B), (0, 0)))
        a_p = jnp.pad(actions, ((0, Bp_r - B), (0, 0)))
    else:
        x_p, a_p = x, actions

    inv_gamma = float(1.0 / gamma)
    log_gamma = float(math.log(gamma))
    in_dim = trim + A
    H = HIDDEN

    # ---- prologue: dist_term for the whole batch, computed exactly once.
    wsdx, wsda, bsd = packed['dist']
    cost_p = pl.CostEstimate(
        flops=int(2 * Bp_r * in_dim * goal_dim + 6 * Bp_r * goal_dim),
        transcendentals=int(2 * Bp_r),
        bytes_accessed=int(4 * Bp_r * (F_x + A + 1)))
    dist_col = pl.pallas_call(
        functools.partial(_dist_kernel, trim_dim=trim, goal_dim=goal_dim,
                          inv_gamma=inv_gamma, log_gamma=log_gamma),
        out_shape=jax.ShapeDtypeStruct((Bp_r, 1), jnp.float32),
        grid_spec=pltpu.PrefetchScalarGridSpec(
            num_scalar_prefetch=0,
            grid=(nrows,),
            in_specs=[pl.BlockSpec((tb_r, F_x), lambda i: (i, 0)),
                      pl.BlockSpec((tb_r, A), lambda i: (i, 0)),
                      pl.BlockSpec(wsdx.shape, lambda i: (0, 0)),
                      pl.BlockSpec(wsda.shape, lambda i: (0, 0)),
                      pl.BlockSpec(bsd.shape, lambda i: (0, 0))],
            out_specs=pl.BlockSpec((tb_r, 1), lambda i: (i, 0))),
        compiler_params=pltpu.CompilerParams(dimension_semantics=("parallel",)),
        cost_estimate=cost_p,
    )(x_p, a_p, wsdx, wsda, bsd)

    # lane-dense [1, Bp_c] column view of the dist term (tiny one-off relayout)
    dist_row = jnp.pad(dist_col[:B, 0], (0, Bp_c - B)).reshape(1, Bp_c)

    # ---- main kernel
    trunk = packed['trunk']
    kernel = functools.partial(_trunk_kernel, trim_dim=trim,
                               compute_dtype=compute_dtype)

    row = lambda i, j: (i, 0)       # resident across the inner column sweep
    col = lambda i, j: (0, j)
    const = lambda i, j: (0, 0)     # weights stay resident for the whole grid

    in_specs = [
        pl.BlockSpec((tb_r, F_x), row),     # x (row view)
        pl.BlockSpec((tb_r, A), row),       # actions (row view)
        pl.BlockSpec((1, tb_c), col),       # precomputed dist_term (col view)
    ] + [pl.BlockSpec(p.shape, const) for p in trunk]

    w_bytes = sum(int(p.size) * p.dtype.itemsize for p in trunk)
    cost_main = pl.CostEstimate(
        flops=int(2 * Bp_r * (in_dim * H + 2 * H * H + H + in_dim) + Bp_r * Bp_c),
        transcendentals=0,
        bytes_accessed=int(out_isz * Bp_r * Bp_c + 4 * Bp_r * (F_x + A)
                           + 4 * Bp_c + w_bytes))

    # Invariant (rs_ref caching): grid = (rows, cols) with the column axis
    # innermost and "arbitrary"; the row axis may be "parallel" (megacore).
    q = pl.pallas_call(
        kernel,
        out_shape=jax.ShapeDtypeStruct((Bp_r, Bp_c), out_dtype),
        grid_spec=pltpu.PrefetchScalarGridSpec(
            num_scalar_prefetch=0,
            grid=(nrows, ncols),
            in_specs=in_specs,
            out_specs=pl.BlockSpec((tb_r, tb_c), lambda i, j: (i, j)),
            scratch_shapes=[pltpu.VMEM((tb_r, 1), jnp.float32)]),
        compiler_params=pltpu.CompilerParams(
            dimension_semantics=("parallel", "arbitrary"),
            vmem_limit_bytes=VMEM_LIMIT_BYTES),
        cost_estimate=cost_main,
    )(x_p, a_p, dist_row, *trunk)

    if Bp_r != B or Bp_c != B:
        q = q[:B, :B]       # padded rows/cols carry bias-only garbage; slice off
    return q


# ----------------------------------------------------------------------------
# Deterministic parameter init (Linear weights stored pre-transposed: [in, out])
# ----------------------------------------------------------------------------
def init_params(key, obs, goal, action):
    in_dim = obs + goal + action   # trim_ag=True branch

    def linear(k, fan_in, fan_out):
        k1, k2 = jax.random.split(k)
        bound = 1.0 / math.sqrt(fan_in)
        w = jax.random.uniform(k1, (fan_in, fan_out), jnp.float32, -bound, bound)
        b = jax.random.uniform(k2, (1, fan_out), jnp.float32, -bound, bound)
        return w, b

    ks = jax.random.split(key, 7)
    return {
        'fc1':       linear(ks[0], in_dim, HIDDEN),
        'skip':      linear(ks[1], in_dim, 1),
        'skip_dist': linear(ks[2], in_dim, goal),
        'fc2':       linear(ks[3], HIDDEN, HIDDEN),
        'fc3':       linear(ks[4], HIDDEN, HIDDEN),
        'add_out':   linear(ks[5], HIDDEN, 1),
        'mult_out':  linear(ks[6], HIDDEN, 1),   # present in module, unused in forward
    }


# ----------------------------------------------------------------------------
# Pure-JAX f32 reference (mirrors the PyTorch forward exactly)
# ----------------------------------------------------------------------------
def reference_forward(x, actions, params, *, goal_dim, max_action, gamma):
    g = x[:, -goal_dim:]
    ag = x[:, -2 * goal_dim:-goal_dim]
    xt = x[:, :-goal_dim]
    xa = jnp.concatenate([xt, actions / max_action], axis=1)
    skip_val = xa @ params['skip'][0] + params['skip'][1]
    skip_dist = xa @ params['skip_dist'][0] + params['skip_dist'][1]
    dist = jnp.sqrt(((g - ag + skip_dist) ** 2).sum(-1))
    h = jax.nn.relu(xa @ params['fc1'][0] + params['fc1'][1])
    h = jax.nn.relu(h @ params['fc2'][0] + params['fc2'][1])
    h = jax.nn.relu(h @ params['fc3'][0] + params['fc3'][1])
    add = h @ params['add_out'][0] + params['add_out'][1]
    return (1.0 / gamma) * (gamma ** (dist / 5.0) - 1.0) + add + skip_val


if __name__ == "__main__":
    # env_params (small, consistent with the module)
    obs, goal, action = 10, 3, 4
    action_max, gamma = 1.0, 0.98

    key = jax.random.PRNGKey(0)
    k_p, k_x, k_a, k_x2, k_a2 = jax.random.split(key, 5)

    params = init_params(k_p, obs, goal, action)
    packed = pack_params(params, obs=obs, goal=goal, max_action=action_max,
                         compute_dtype=jnp.bfloat16)

    # --- test 1: tiny batch (single row tile, single column tile)
    batch = 8
    x = jax.random.normal(k_x, (batch, obs + 2 * goal), jnp.float32)   # obs ++ ag ++ g
    actions = jax.random.uniform(k_a, (batch, action), jnp.float32, -1.0, 1.0)

    q = value_prior_critic_forward(x, actions, packed,
                                   obs_dim=obs, goal_dim=goal, gamma=gamma)
    q = jax.block_until_ready(q)
    q_ref = reference_forward(x, actions, params,
                              goal_dim=goal, max_action=action_max, gamma=gamma)
    assert q.shape == (batch, batch), q.shape
    err1 = float(jnp.max(jnp.abs(q - q_ref)))
    assert jnp.allclose(q, q_ref, atol=5e-2, rtol=5e-2), f"max abs err = {err1}"

    # --- test 2: exercises multi row-tile + multi column-tile path
    #     (trunk caching across the innermost column axis + padding slice-off)
    batch2 = 200
    x2 = jax.random.normal(k_x2, (batch2, obs + 2 * goal), jnp.float32)
    a2 = jax.random.uniform(k_a2, (batch2, action), jnp.float32, -1.0, 1.0)
    q2 = value_prior_critic_forward(x2, a2, packed,
                                    obs_dim=obs, goal_dim=goal, gamma=gamma,
                                    max_col_tile=128)   # force ncols > 1 at small B
    q2 = jax.block_until_ready(q2)
    q2_ref = reference_forward(x2, a2, params,
                               goal_dim=goal, max_action=action_max, gamma=gamma)
    assert q2.shape == (batch2, batch2), q2.shape
    err2 = float(jnp.max(jnp.abs(q2 - q2_ref)))
    assert jnp.allclose(q2, q2_ref, atol=5e-2, rtol=5e-2), f"max abs err = {err2}"

    print("KERNEL_OK")
</pallas_src>

<mosaic_0001>
module attributes {stable_mosaic.version = 11 : i64} {
  func.func @_dist_kernel(%arg0: i32, %arg1: memref<8x16xf32, #tpu.memory_space<vmem>>, %arg2: memref<8x4xf32, #tpu.memory_space<vmem>>, %arg3: memref<13x3xf32, #tpu.memory_space<vmem>>, %arg4: memref<4x3xf32, #tpu.memory_space<vmem>>, %arg5: memref<1x3xf32, #tpu.memory_space<vmem>>, %arg6: memref<8x1xf32, #tpu.memory_space<vmem>>) attributes {dimension_semantics = [#tpu.dimension_semantics<parallel>], iteration_bounds = array<i64: 1>, scalar_prefetch = 0 : i64, scratch_operands = 0 : i64, tpu.core_type = #tpu.core_type<tc>, window_params = [{transform_indices = @transform_0, window_bounds = array<i64: 8, 16>}, {transform_indices = @transform_1, window_bounds = array<i64: 8, 4>}, {pipeline_mode = #tpu.pipeline_mode<synchronous>, transform_indices = @transform_2, window_bounds = array<i64: 13, 3>}, {pipeline_mode = #tpu.pipeline_mode<synchronous>, transform_indices = @transform_3, window_bounds = array<i64: 4, 3>}, {pipeline_mode = #tpu.pipeline_mode<synchronous>, transform_indices = @transform_4, window_bounds = array<i64: 1, 3>}, {transform_indices = @transform_5, window_bounds = array<i64: 8, 1>}]} {
    %c0 = arith.constant 0 : index
    %c0_0 = arith.constant 0 : index
    %0 = vector.load %arg1[%c0, %c0_0] : memref<8x16xf32, #tpu.memory_space<vmem>>, vector<8x16xf32>
    %1 = vector.extract_strided_slice %0 {offsets = [0, 0], sizes = [8, 13], strides = [1, 1]} : vector<8x16xf32> to vector<8x13xf32>
    %c0_1 = arith.constant 0 : index
    %c0_2 = arith.constant 0 : index
    %2 = vector.load %arg2[%c0_1, %c0_2] : memref<8x4xf32, #tpu.memory_space<vmem>>, vector<8x4xf32>
    %c0_3 = arith.constant 0 : index
    %c0_4 = arith.constant 0 : index
    %3 = vector.load %arg3[%c0_3, %c0_4] : memref<13x3xf32, #tpu.memory_space<vmem>>, vector<13x3xf32>
    %cst = arith.constant dense<0.000000e+00> : vector<8x3xf32>
    %4 = tpu.matmul %1, %3, %cst {dimension_numbers = #tpu.dot_dimension_numbers<[1], [0], [0], [1], [0, 0, 1, 1], [], []>} : vector<8x13xf32>, vector<13x3xf32>, vector<8x3xf32> -> vector<8x3xf32>
    %c0_5 = arith.constant 0 : index
    %c0_6 = arith.constant 0 : index
    %5 = vector.load %arg4[%c0_5, %c0_6] : memref<4x3xf32, #tpu.memory_space<vmem>>, vector<4x3xf32>
    %cst_7 = arith.constant dense<0.000000e+00> : vector<8x3xf32>
    %6 = tpu.matmul %2, %5, %cst_7 {dimension_numbers = #tpu.dot_dimension_numbers<[1], [0], [0], [1], [0, 0, 1, 1], [], []>} : vector<8x4xf32>, vector<4x3xf32>, vector<8x3xf32> -> vector<8x3xf32>
    %7 = arith.addf %4, %6 : vector<8x3xf32>
    %c0_8 = arith.constant 0 : index
    %c0_9 = arith.constant 0 : index
    %8 = vector.load %arg5[%c0_8, %c0_9] : memref<1x3xf32, #tpu.memory_space<vmem>>, vector<1x3xf32>
    %9 = vector.broadcast %8 : vector<1x3xf32> to vector<8x3xf32>
    %10 = arith.addf %7, %9 : vector<8x3xf32>
    %11 = vector.extract_strided_slice %0 {offsets = [0, 13], sizes = [8, 3], strides = [1, 1]} : vector<8x16xf32> to vector<8x3xf32>
    %12 = vector.extract_strided_slice %0 {offsets = [0, 10], sizes = [8, 3], strides = [1, 1]} : vector<8x16xf32> to vector<8x3xf32>
    %13 = arith.subf %11, %12 : vector<8x3xf32>
    %14 = arith.addf %13, %10 : vector<8x3xf32>
    %15 = arith.mulf %14, %14 : vector<8x3xf32>
    %cst_10 = arith.constant dense<0.000000e+00> : vector<8xf32>
    %16 = vector.multi_reduction <add>, %15, %cst_10 [1] : vector<8x3xf32> to vector<8xf32>
    %17 = vector.shape_cast %16 : vector<8xf32> to vector<8x1xf32>
    %18 = math.sqrt %17 : vector<8x1xf32>
    %cst_11 = arith.constant 2.000000e-01 : f32
    %19 = vector.broadcast %cst_11 : f32 to vector<8x1xf32>
    %20 = arith.mulf %18, %19 : vector<8x1xf32>
    %cst_12 = arith.constant -0.0202027075 : f32
    %21 = vector.broadcast %cst_12 : f32 to vector<8x1xf32>
    %22 = arith.mulf %21, %20 : vector<8x1xf32>
    %23 = math.exp %22 : vector<8x1xf32>
    %cst_13 = arith.constant 1.000000e+00 : f32
    %24 = vector.broadcast %cst_13 : f32 to vector<8x1xf32>
    %25 = arith.subf %23, %24 : vector<8x1xf32>
    %cst_14 = arith.constant 1.02040815 : f32
    %26 = vector.broadcast %cst_14 : f32 to vector<8x1xf32>
    %27 = arith.mulf %25, %26 : vector<8x1xf32>
    %c0_15 = arith.constant 0 : index
    %c0_16 = arith.constant 0 : index
    %28 = vector.load %arg6[%c0_15, %c0_16] : memref<8x1xf32, #tpu.memory_space<vmem>>, vector<8x1xf32>
    tpu.vector_store %arg6[%c0_15, %c0_16], %27 {strides = array<i32>} : memref<8x1xf32, #tpu.memory_space<vmem>>, vector<8x1xf32>,
    return
  }
  func.func @transform_0(%arg0: i32) -> (i32, i32) {
    %c0_i32 = arith.constant 0 : i32
    %c0_i32_0 = arith.constant 0 : i32
    return %arg0, %c0_i32 : i32, i32
  }
  func.func @transform_1(%arg0: i32) -> (i32, i32) {
    %c0_i32 = arith.constant 0 : i32
    %c0_i32_0 = arith.constant 0 : i32
    return %arg0, %c0_i32 : i32, i32
  }
  func.func @transform_2(%arg0: i32) -> (i32, i32) {
    %c0_i32 = arith.constant 0 : i32
    %c0_i32_0 = arith.constant 0 : i32
    %c0_i32_1 = arith.constant 0 : i32
    return %c0_i32, %c0_i32_0 : i32, i32
  }
  func.func @transform_3(%arg0: i32) -> (i32, i32) {
    %c0_i32 = arith.constant 0 : i32
    %c0_i32_0 = arith.constant 0 : i32
    %c0_i32_1 = arith.constant 0 : i32
    return %c0_i32, %c0_i32_0 : i32, i32
  }
  func.func @transform_4(%arg0: i32) -> (i32, i32) {
    %c0_i32 = arith.constant 0 : i32
    %c0_i32_0 = arith.constant 0 : i32
    %c0_i32_1 = arith.constant 0 : i32
    return %c0_i32, %c0_i32_0 : i32, i32
  }
  func.func @transform_5(%arg0: i32) -> (i32, i32) {
    %c0_i32 = arith.constant 0 : i32
    %c0_i32_0 = arith.constant 0 : i32
    return %arg0, %c0_i32 : i32, i32
  }
}

</mosaic_0001>

<bundles_post_ra>
// kernel: tpu_custom_call.1
= control target key start
LH: loop header
LB: loop body
LE: loop exit
PB: predicated region body
PF: predicated region fallthrough
CT: control target
= control target key end

     0   :  { %vm57_vm0 = vcmask 1044480   ;;  %vm29_vm1 = vcmask 1043456   ;;  %vm25_vm2 = vcmask 31744   ;;  %vm53_vm3 = vcmask 105472   ;;  %s141_s28 = smov 3   ;;  %s195_s2 = inlined_call_operand.vmem [shape: f32[13,3], index: 2, kind: input, shape index: {}]   ;;  %s196_s3 = inlined_call_operand.vmem [shape: f32[4,3], index: 3, kind: input, shape index: {}]   ;;  %s197_s1 = inlined_call_operand.vmem [shape: f32[8,4], index: 1, kind: input, shape index: {}]   ;;  %s198_s0 = inlined_call_operand.vmem [shape: f32[8,16], index: 0, kind: input, shape index: {}]   ;;  %s199_s4 = inlined_call_operand.vmem [shape: f32[1,3], index: 4, kind: input, shape index: {}]   ;;  %s200_s5 = inlined_call_operand.vmem [shape: f32[8,1], index: 5, kind: output, shape index: {}]  }
   0x1   :  { %v23_v0 = vld [vmem:[%s195_s2 + $0x8] sm:$0x1f]  ;;  %v24_v1 = vld [vmem:[%s196_s3] sm:$0xf]  ;;  %vm100_vm4 = vcmask 23552   ;;  %vm122_vm7 = vcmask 7168  }
   0x2   :  { %v22_v2 = vld [vmem:[%s195_s2] sm:$0xff]  ;;  %130 = vmatpush.msk.msra.mxu1 %vm57_vm0, %v23_v0  ;;  %128 = vmatpush.msk.msra.mxu0 %vm29_vm1, %v24_v1  ;;  %s142_s2 = smov 13  }
   0x3   :  { %v21_v3 = vld [vmem:[%s197_s1] sm:$0xff] }
   0x4   :  { %v20_v4 = vld [vmem:[%s198_s0] sm:$0xff]  ;;  %129 = vmatmul.msk.f32.vlgmr.msra.gmra.mxu0 %vm25_vm2, %v21_v3  ;;  %76 = vmatpush.msra.mxu1 %v22_v2  ;;  %s143_s0 = smov 115  }
   0x5   :  { %86 = vrot.lane.b32.xlu0 %v20_v4, %s141_s28  ;;  %131 = vmatmul.msk.f32.vlgmr.msra.gmra.mxu1 %vm53_vm3, %v20_v4  ;;  %v136_v6 = vld [vmem:[%s199_s4] ss:$0 sm:$0xff] }
  0x77   :  { %v87_v10 = vpop.permute.xlu0 %86 }
  0x78   :  { %v89_v11 = vsub.f32 %v20_v4, %v87_v10 }
  0x81   :  { %v50_v5 = vpop.f32.mrf.mxu0 }
  0x82   :  { %v78_v7 = vpop.f32.mrf.mxu1 }
  0x83   :  { %v79_v8 = vadd.f32 %v78_v7, %v50_v5 }
  0x85   :  { %v85_v9 = vadd.f32 %v136_v6, %v79_v8 }
  0x87   :  { %91 = vrot.lane.b32.xlu0 %v85_v9, %s142_s2 }
  0xf9   :  { %v92_v12 = vpop.permute.xlu0 %91 }
  0xfa   :  { %v94_v13 = vadd.f32 %v92_v12, %v89_v11 }
  0xfc   :  { %v95_v14 = vmul.f32 %v94_v13, %v94_v13 }
  0xfe   :  { %97 = vrot.lane.b32.xlu1 %v95_v14, %s143_s0 }
 0x170   :  { %v98_v15 = vpop.permute.xlu1 %97 }
 0x171   :  { %v101_v16 = vsel %vm100_vm4, %v98_v15, 0.0 }
 0x172   :  { %102 = vadd.xlane.f32.xlu1 %v101_v16 }
 0x1e5   :  { %v103_v17 = vpop.xlane.xlu1 %102 }
 0x1e6   :  { %137 = vrsqrt.f32 %v103_v17  ;;  %vm111_vm5 = vcmp.eq.f32.partialorder %v103_v17, inf  ;;  %v114_v25 = vand.u32 2147483648, %v103_v17  ;;  %vm113_vm6 = vcmp.eq.f32.partialorder %v103_v17, 0.0 }
 0x1ec   :  { %v138_v18 = vpop.eup %137 }
 0x1ed   :  { %v105_v19 = vmul.f32 %v138_v18, %v103_v17 }
 0x1ef   :  { %v106_v20 = vmul.f32 %v138_v18, %v105_v19 }
 0x1f1   :  { %v107_v21 = vmul.f32 0.5, %v106_v20 }
 0x1f3   :  { %v108_v22 = vsub.f32 1.5, %v107_v21 }
 0x1f5   :  { %v109_v23 = vmul.f32 %v138_v18, %v108_v22 }
 0x1f7   :  { %v110_v24 = vmul.f32 %v109_v23, %v103_v17 }
 0x1f9   :  { %v112_v26 = vsel %vm111_vm5, %v103_v17, %v110_v24 }
 0x1fa   :  { %v115_v27 = vsel %vm113_vm6, %v114_v25, %v112_v26 }
 0x1fb   :  { %v116_v28 = vmul.f32 0.2, %v115_v27 }
 0x1fd   :  { %v117_v29 = vmul.f32 -0.020202707, %v116_v28 }
 0x1ff   :  { %v118_v30 = vmul.f32 1.442695, %v117_v29 }
 0x201   :  { %139 = vpow2.f32 %v118_v30 }
 0x207   :  { %v140_v31 = vpop.eup %139 }
 0x208   :  { %v132_v32 = vadd.f32 -1.0, %v140_v31 }
 0x20a   :  { %v121_v33 = vmul.f32 1.0204082, %v132_v32 }
 0x20c   :  { %123 = vst.msk [vmem:[%s200_s5] sm:$0xff] %vm122_vm7, %v121_v33 }

</bundles_post_ra>
